<compile_context>
chip_gen: v6e
topology: v6e:2x2x1
jax: 0.10.0
libtpu: 0.0.40
codegen_flags: <defaults>
</compile_context>

<pallas_src>
import jax
import jax.numpy as jnp
from jax.experimental import pallas as pl
from jax.experimental.pallas import tpu as pltpu


def _hardswish_kernel(x_ref, o_ref):
    x = x_ref[...]
    # relu6(x + 3) == clamp(x + 3, 0, 6)
    r6 = jnp.clip(x + 3.0, 0.0, 6.0)
    o_ref[...] = (x * r6 * (1.0 / 6.0)).astype(o_ref.dtype)


# Lane-dense last dim for the flattened slab (multiple of 128).
_LANE_K = 1024
# Target bytes per block buffer (one tile of one operand) — mem-bound sweet
# spot is ~1-4 MiB; 4 buffers (in/out double-buffered) => ~16 MiB total.
_TARGET_BLOCK_BYTES = 4 * 1024 * 1024


def hardswish(x: jax.Array) -> jax.Array:
    """HardSwish on an arbitrary-shape tensor via a Pallas TPU kernel."""
    orig_shape = x.shape
    dtype = x.dtype
    itemsize = jnp.dtype(dtype).itemsize

    flat = x.reshape(-1)
    total = flat.size

    k = _LANE_K
    rows = pl.cdiv(total, k)

    # Row tile: multiple of 8, sized so one block is ~_TARGET_BLOCK_BYTES,
    # never larger than the (8-rounded) number of rows actually needed.
    tm = max(8, (_TARGET_BLOCK_BYTES // (k * itemsize)) // 8 * 8)
    tm = min(tm, ((rows + 7) // 8) * 8)

    # Pad so the grid divides evenly (no partial blocks / masked stores).
    rows_padded = ((rows + tm - 1) // tm) * tm
    padded_total = rows_padded * k
    if padded_total != total:
        flat = jnp.pad(flat, (0, padded_total - total))
    x2d = flat.reshape(rows_padded, k)

    grid = (rows_padded // tm,)

    out2d = pl.pallas_call(
        _hardswish_kernel,
        out_shape=jax.ShapeDtypeStruct((rows_padded, k), dtype),
        grid_spec=pltpu.PrefetchScalarGridSpec(
            num_scalar_prefetch=0,
            grid=grid,
            in_specs=[pl.BlockSpec((tm, k), lambda i: (i, 0))],
            out_specs=pl.BlockSpec((tm, k), lambda i: (i, 0)),
        ),
        compiler_params=pltpu.CompilerParams(
            dimension_semantics=("parallel",),
            # ~16 MiB of block buffers + headroom; above v5e's 16 MiB default,
            # comfortably below v7x's 64 MiB physical VMEM.
            vmem_limit_bytes=48 * 1024 * 1024,
        ),
    )(x2d)

    out_flat = out2d.reshape(-1)
    if padded_total != total:
        out_flat = out_flat[:total]
    return out_flat.reshape(orig_shape)


if __name__ == "__main__":
    key = jax.random.PRNGKey(0)
    x = jax.random.normal(key, (2, 4, 16, 16), dtype=jnp.float32) * 4.0

    out = hardswish(x)
    jax.block_until_ready(out)

    # Reference check (plain JAX)
    ref = x * jnp.clip(x + 3.0, 0.0, 6.0) / 6.0
    assert out.shape == x.shape and out.dtype == x.dtype
    assert jnp.allclose(out, ref, atol=1e-5, rtol=1e-5)

    print("KERNEL_OK")
</pallas_src>

<mosaic_0001>
module attributes {stable_mosaic.version = 11 : i64} {
  func.func @_hardswish_kernel(%arg0: i32, %arg1: memref<8x1024xf32, #tpu.memory_space<vmem>>, %arg2: memref<8x1024xf32, #tpu.memory_space<vmem>>) attributes {dimension_semantics = [#tpu.dimension_semantics<parallel>], iteration_bounds = array<i64: 1>, scalar_prefetch = 0 : i64, scratch_operands = 0 : i64, tpu.core_type = #tpu.core_type<tc>, window_params = [{transform_indices = @transform_0, window_bounds = array<i64: 8, 1024>}, {transform_indices = @transform_1, window_bounds = array<i64: 8, 1024>}]} {
    %c0 = arith.constant 0 : index
    %c0_0 = arith.constant 0 : index
    %0 = vector.load %arg1[%c0, %c0_0] : memref<8x1024xf32, #tpu.memory_space<vmem>>, vector<8x1024xf32>
    %cst = arith.constant 3.000000e+00 : f32
    %1 = vector.broadcast %cst : f32 to vector<8x1024xf32>
    %2 = arith.addf %0, %1 : vector<8x1024xf32>
    %cst_1 = arith.constant 0.000000e+00 : f32
    %cst_2 = arith.constant 6.000000e+00 : f32
    %3 = vector.broadcast %cst_1 : f32 to vector<8x1024xf32>
    %4 = arith.maximumf %3, %2 : vector<8x1024xf32>
    %5 = vector.broadcast %cst_2 : f32 to vector<8x1024xf32>
    %6 = arith.minimumf %5, %4 : vector<8x1024xf32>
    %7 = arith.mulf %0, %6 : vector<8x1024xf32>
    %cst_3 = arith.constant 0.166666672 : f32
    %8 = vector.broadcast %cst_3 : f32 to vector<8x1024xf32>
    %9 = arith.mulf %7, %8 : vector<8x1024xf32>
    %c0_4 = arith.constant 0 : index
    %c0_5 = arith.constant 0 : index
    %10 = vector.load %arg2[%c0_4, %c0_5] : memref<8x1024xf32, #tpu.memory_space<vmem>>, vector<8x1024xf32>
    tpu.vector_store %arg2[%c0_4, %c0_5], %9 {strides = array<i32>} : memref<8x1024xf32, #tpu.memory_space<vmem>>, vector<8x1024xf32>,
    return
  }
  func.func @transform_0(%arg0: i32) -> (i32, i32) {
    %c0_i32 = arith.constant 0 : i32
    %c0_i32_0 = arith.constant 0 : i32
    return %arg0, %c0_i32 : i32, i32
  }
  func.func @transform_1(%arg0: i32) -> (i32, i32) {
    %c0_i32 = arith.constant 0 : i32
    %c0_i32_0 = arith.constant 0 : i32
    return %arg0, %c0_i32 : i32, i32
  }
}

</mosaic_0001>

<bundles_post_ra>
// kernel: tpu_custom_call.1
= control target key start
LH: loop header
LB: loop body
LE: loop exit
PB: predicated region body
PF: predicated region fallthrough
CT: control target
= control target key end

     0   :  { %6 = vsyncpa [#allocation3], 0  ;;  %s156_s0 = inlined_call_operand.hbm [shape: f32[8,1024], index: 0, kind: input, shape index: {}]   ;;  %s157_s1 = inlined_call_operand.hbm [shape: f32[8,1024], index: 1, kind: output, shape index: {}]  }
   0x1   :  { %7 = vsyncpa [#allocation4], 0  ;;  %s138_s6 = smov [#allocation2]  }
   0x2   :  { %s14_s7 = sshll.u32 %s138_s6, 4  ;;  %s15_s7 = int_to_ptr.vmem [resolvable:$true] %s14_s7 }
   0x3   :  { %s102_s8 = scalar_lea.vmem %s15_s7, 1024  ;;  %p107_p1 = scmp.lt.s32.totalorder %s15_s7, %s15_s7 }
   0x4   :  { %p103_p0 = scmp.ne.s32.totalorder %s15_s7, %s102_s8  ;;  %p108_p2 = scmp.lt.s32.totalorder %s102_s8, %s102_s8 }
   0x6   :  { %p109_p3 = por %p108_p2, %p107_p1 }
   0x8   :  { %p110_p4 = pnand %p109_p3, %p103_p0 }
   0xa   :  { %113 = shalt.err (!%p110_p4)
}
   0xb   :  { %17 = dma.hbm_to_vmem [thread:$0]  %s156_s0, 1024, %s15_s7, [#allocation3]  }
   0xc   :  { %134 = dma.done.wait [#allocation3], 1024  }
   0xd   :  { %135 = vsyncadd [#allocation3], 4294966272  ;;  %v21_v0 = vld [vmem:[#allocation2] sm:$0xff]  ;;  %v22_v1 = vld [vmem:[#allocation2 + $0x8] sm:$0xff]  ;;  %s139_s0 = smov [#allocation5]  }
   0xe   :  { %v23_v2 = vld [vmem:[#allocation2 + $0x10] sm:$0xff]  ;;  %v29_v3 = vadd.f32 3.0, %v21_v0  ;;  %v30_v4 = vadd.f32 3.0, %v22_v1  ;;  %v24_v6 = vld [vmem:[#allocation2 + $0x18] sm:$0xff]  ;;  %v25_v7 = vld [vmem:[#allocation2 + $0x20] sm:$0xff]  ;;  %s83_s11 = sshll.u32 %s139_s0, 4  ;;  %s84_s11 = int_to_ptr.vmem [resolvable:$true] %s83_s11 }
   0xf   :  { %v31_v5 = vadd.f32 3.0, %v23_v2  ;;  %v26_v8 = vld [vmem:[#allocation2 + $0x28] sm:$0xff]  ;;  %v32_v9 = vadd.f32 3.0, %v24_v6  ;;  %v33_v10 = vadd.f32 3.0, %v25_v7  ;;  %v27_v12 = vld [vmem:[#allocation2 + $0x30] sm:$0xff]  ;;  %v28_v13 = vld [vmem:[#allocation2 + $0x38] sm:$0xff]  ;;  %p119_p6 = scmp.lt.s32.totalorder %s84_s11, %s84_s11 }
  0x10   :  { %v34_v11 = vadd.f32 3.0, %v26_v8  ;;  %v37_v14 = vmax.f32 %v29_v3, 0.0  ;;  %v38_v15 = vmax.f32 %v30_v4, 0.0  ;;  %v35_v17 = vadd.f32 3.0, %v27_v12  ;;  %s114_s12 = scalar_lea.vmem %s84_s11, 1024 }
  0x11   :  { %v39_v16 = vmax.f32 %v31_v5, 0.0  ;;  %v40_v18 = vmax.f32 %v32_v9, 0.0  ;;  %v41_v19 = vmax.f32 %v33_v10, 0.0  ;;  %v36_v21 = vadd.f32 3.0, %v28_v13  ;;  %p115_p5 = scmp.ne.s32.totalorder %s84_s11, %s114_s12  ;;  %p120_p7 = scmp.lt.s32.totalorder %s114_s12, %s114_s12 }
  0x12   :  { %v42_v20 = vmax.f32 %v34_v11, 0.0  ;;  %v45_v22 = vmin.f32 %v37_v14, 6.0  ;;  %v46_v23 = vmin.f32 %v38_v15, 6.0  ;;  %v43_v25 = vmax.f32 %v35_v17, 0.0 }
  0x13   :  { %v47_v24 = vmin.f32 %v39_v16, 6.0  ;;  %v48_v26 = vmin.f32 %v40_v18, 6.0  ;;  %v49_v27 = vmin.f32 %v41_v19, 6.0  ;;  %v44_v29 = vmax.f32 %v36_v21, 0.0  ;;  %p121_p8 = por %p120_p7, %p119_p6 }
  0x14   :  { %v50_v28 = vmin.f32 %v42_v20, 6.0  ;;  %v53_v30 = vmul.f32 %v45_v22, %v21_v0  ;;  %v54_v31 = vmul.f32 %v46_v23, %v22_v1  ;;  %v51_v33 = vmin.f32 %v43_v25, 6.0 }
  0x15   :  { %v55_v32 = vmul.f32 %v47_v24, %v23_v2  ;;  %v56_v34 = vmul.f32 %v48_v26, %v24_v6  ;;  %v57_v35 = vmul.f32 %v49_v27, %v25_v7  ;;  %v52_v37 = vmin.f32 %v44_v29, 6.0  ;;  %p122_p9 = pnand %p121_p8, %p115_p5 }
  0x16   :  { %v58_v36 = vmul.f32 %v50_v28, %v26_v8  ;;  %v61_v38 = vmul.f32 0.16666667, %v53_v30  ;;  %v62_v39 = vmul.f32 0.16666667, %v54_v31  ;;  %v59_v41 = vmul.f32 %v51_v33, %v27_v12 }
  0x17   :  { %v63_v40 = vmul.f32 0.16666667, %v55_v32  ;;  %v64_v42 = vmul.f32 0.16666667, %v56_v34  ;;  %v65_v43 = vmul.f32 0.16666667, %v57_v35  ;;  %v60_v45 = vmul.f32 %v52_v37, %v28_v13 }
  0x18   :  { %v66_v44 = vmul.f32 0.16666667, %v58_v36  ;;  %69 = vst [vmem:[#allocation5] sm:$0xff] %v61_v38  ;;  %70 = vst [vmem:[#allocation5 + $0x8] sm:$0xff] %v62_v39  ;;  %v67_v46 = vmul.f32 0.16666667, %v59_v41 }
  0x19   :  { %71 = vst [vmem:[#allocation5 + $0x10] sm:$0xff] %v63_v40  ;;  %72 = vst [vmem:[#allocation5 + $0x18] sm:$0xff] %v64_v42  ;;  %v68_v47 = vmul.f32 0.16666667, %v60_v45 }
  0x1a   :  { %73 = vst [vmem:[#allocation5 + $0x20] sm:$0xff] %v65_v43  ;;  %74 = vst [vmem:[#allocation5 + $0x28] sm:$0xff] %v66_v44 }
  0x1b   :  { %75 = vst [vmem:[#allocation5 + $0x30] sm:$0xff] %v67_v46  ;;  %76 = vst [vmem:[#allocation5 + $0x38] sm:$0xff] %v68_v47 }
  0x1c   :  { %125 = shalt.err (!%p122_p9)
}
  0x1d   :  { %86 = dma.vmem_to_hbm [thread:$0]  %s84_s11, 1024, %s157_s1, [#allocation4]  }
  0x1e   :  { %136 = dma.done.wait [#allocation4], 1024  }
  0x1f   :  { %137 = vsyncadd [#allocation4], 4294966272 }
  0x20   :  { %90 = vsyncpa [#allocation3], 1 }
  0x21   :  { %91 = vsyncpa [#allocation4], 1 }

</bundles_post_ra>
